<compile_context>
chip_gen: v6e
topology: v6e:2x2x1
jax: 0.10.0
libtpu: 0.0.40
codegen_flags: <defaults>
</compile_context>

<pallas_src>
import functools

import jax
import jax.numpy as jnp
from jax import lax
from jax.experimental import pallas as pl
from jax.experimental.pallas import tpu as pltpu

N_BINS = 15
_LANES = 128   # one vreg row of bins (bins 15..127 stay identically zero)
_SUB = 8       # sublane count of one f32 vreg


def _vmem_capacity_bytes():
    try:
        return int(pltpu.get_tpu_info().vmem_capacity_bytes)
    except Exception:
        return 64 << 20   # conservative fallback (v7x per-core physical VMEM)


def _batch_tile(n, c, n_big_blocks, tile_rows=None):
    """Rows per batch tile + explicit scoped-VMEM limit, per generation.

    n_big_blocks double-buffered (tn, c) f32 blocks are sized to ~1/2 of this
    generation's physical VMEM (v5e/v6e ~10 MiB blocks, v7x ~5 MiB), and the
    scoped limit is raised to 3/4 of physical so small defaults (v5e: 16 MiB)
    don't shrink the schedule.
    """
    vmem_cap = _vmem_capacity_bytes()
    vmem_limit = (vmem_cap * 3) // 4
    if tile_rows is not None:                   # test/override path
        return min(tile_rows, n), vmem_limit
    budget = vmem_cap // 2
    per_block = budget // (2 * n_big_blocks)    # 2 = double buffering
    rows = per_block // (4 * max(c, 1))
    rows = max(_SUB, (rows // _SUB) * _SUB)     # (8,128) tiling rule
    tn = n if rows >= n else rows
    return tn, vmem_limit


# ----------------------------------------------------------------------------
# ModelWithTemperature.temperature_scale: logits / T   (forward() tail)
# ----------------------------------------------------------------------------
def _temp_scale_kernel(temp_ref, logits_ref, out_ref):
    # x * (1/T): one scalar reciprocal, the vector multiply rides the VALU
    # slots and stays hidden under the DMA (a vector divide would hog the EUP).
    inv_t = 1.0 / temp_ref[0]
    out_ref[...] = (logits_ref[...].astype(jnp.float32) * inv_t).astype(out_ref.dtype)


def temperature_scale(logits, temperature, *, tile_rows=None):
    """logits: f32 [N, C]; temperature: f32 [1]. Returns f32 [N, C]."""
    logits = logits.astype(jnp.float32)
    n, c = logits.shape
    tn, vmem_limit = _batch_tile(n, c, n_big_blocks=2, tile_rows=tile_rows)
    return pl.pallas_call(
        _temp_scale_kernel,
        out_shape=jax.ShapeDtypeStruct((n, c), jnp.float32),
        grid_spec=pltpu.PrefetchScalarGridSpec(
            num_scalar_prefetch=1,
            grid=(pl.cdiv(n, tn),),
            in_specs=[pl.BlockSpec((tn, c), lambda i, t: (i, 0))],
            out_specs=pl.BlockSpec((tn, c), lambda i, t: (i, 0)),
        ),
        compiler_params=pltpu.CompilerParams(
            dimension_semantics=("parallel",),
            vmem_limit_bytes=vmem_limit,
        ),
    )(temperature.astype(jnp.float32).reshape(1), logits)


# ----------------------------------------------------------------------------
# Fused: temperature scaling + _ECELoss binning in a single HBM pass
# ----------------------------------------------------------------------------
def _fused_scale_ece_kernel(temp_ref, logits_ref, label_ref,
                            scaled_ref, diff_ref, *,
                            n_total, n_bins, tiles_per_core):
    p = pl.program_id(0)          # core split ("parallel")
    i = pl.program_id(1)          # batch-tile reduction ("arbitrary")

    @pl.when(i == 0)
    def _():
        diff_ref[...] = jnp.zeros_like(diff_ref)

    inv_t = 1.0 / temp_ref[0]
    x = logits_ref[...].astype(jnp.float32)          # (TN, C) raw logits
    lab = label_ref[...].astype(jnp.float32)         # (TN, C) one-hot-ish labels
    tn, c = x.shape

    # --- output 1: temperature-scaled logits (fused, single pass) ---
    s = x * inv_t
    scaled_ref[...] = s.astype(scaled_ref.dtype)

    # --- ECE partials on the same resident tile ---
    cls_idx = lax.broadcasted_iota(jnp.int32, (tn, c), 1)

    # torch.max(sigmoid(s), 1): sigmoid is monotone, so max / first-argmax is
    # taken on the scaled tile; the sigmoid runs only on the (TN,1) row max.
    row_max = jnp.max(s, axis=1, keepdims=True)                              # (TN,1)
    pred = jnp.min(jnp.where(s == row_max, cls_idx, c), axis=1, keepdims=True)
    conf = 1.0 / (1.0 + jnp.exp(-row_max))                                   # (TN,1)

    # torch.max(labels, 1): label argmax folded into the kernel (first max).
    lab_max = jnp.max(lab, axis=1, keepdims=True)
    true = jnp.min(jnp.where(lab == lab_max, cls_idx, c), axis=1, keepdims=True)

    acc = (pred == true).astype(jnp.float32)                                 # (TN,1)

    # Mask rows past the real batch (partial last tile / clamped spare tile).
    tile_idx = p * tiles_per_core + i                 # un-clamped global tile id
    row_ids = tile_idx * tn + lax.broadcasted_iota(jnp.int32, (tn, 1), 0)
    valid = row_ids < n_total
    conf_m = jnp.where(valid, conf, 0.0)
    d = jnp.where(valid, conf - acc, 0.0)                                    # (TN,1)

    # One-hot binning over a lane-dense 128 axis: one select + one sublane
    # reduce. PyTorch bin b covers (b/n_bins, (b+1)/n_bins]; ceil-index matches
    # (conf exactly 0.0 would be dropped by PyTorch but lands in bin 0 here).
    bin_idx = jnp.clip(
        jnp.ceil(conf_m * n_bins).astype(jnp.int32) - 1, 0, n_bins - 1)      # (TN,1)
    lane = lax.broadcasted_iota(jnp.int32, (tn, _LANES), 1)
    binned = jnp.where(lane == bin_idx, d, 0.0)                              # (TN,128)
    partial = jnp.sum(binned, axis=0, keepdims=True)                         # (1,128)

    # Per-bin partial of (sum_conf_b - sum_acc_b); abs + /N happen in wrapper.
    diff_ref[0:1, :] = diff_ref[0:1, :] + partial


def temperature_scale_and_ece(logits, labels, temperature, n_bins=N_BINS, *,
                              tile_rows=None):
    """Fused forward: returns (logits / T, ECE(logits / T, labels)).

    logits: f32 [N, C]; labels: f32 [N, C] (one-hot-ish); temperature: f32 [1].
    """
    logits = logits.astype(jnp.float32)
    labels = labels.astype(jnp.float32)
    n, c = logits.shape
    tn, vmem_limit = _batch_tile(n, c, n_big_blocks=3, tile_rows=tile_rows)

    total_tiles = pl.cdiv(n, tn)
    n_par = 2 if total_tiles >= 2 else 1   # split batch across the 2 TCs (v7x)
    tpc = pl.cdiv(total_tiles, n_par)      # tiles per core
    last = total_tiles - 1

    def tile_map(p, i, t):
        del t
        # Odd split: the spare iteration is clamped onto the last real tile;
        # its ECE contribution is masked out in-kernel and its scaled-logits
        # write is an identical, benign re-write of that tile.
        return (jnp.minimum(p * tpc + i, last), 0)

    scaled, diff = pl.pallas_call(
        functools.partial(_fused_scale_ece_kernel, n_total=n, n_bins=n_bins,
                          tiles_per_core=tpc),
        out_shape=(jax.ShapeDtypeStruct((n, c), jnp.float32),
                   jax.ShapeDtypeStruct((n_par * _SUB, _LANES), jnp.float32)),
        grid_spec=pltpu.PrefetchScalarGridSpec(
            num_scalar_prefetch=1,
            grid=(n_par, tpc),
            in_specs=[pl.BlockSpec((tn, c), tile_map),      # logits
                      pl.BlockSpec((tn, c), tile_map)],     # labels
            out_specs=[pl.BlockSpec((tn, c), tile_map),     # scaled logits
                       # per-core resident accumulator slab
                       pl.BlockSpec((_SUB, _LANES), lambda p, i, t: (p, 0))],
        ),
        compiler_params=pltpu.CompilerParams(
            dimension_semantics=("parallel", "arbitrary"),
            vmem_limit_bytes=vmem_limit,
        ),
    )(temperature.astype(jnp.float32).reshape(1), logits, labels)

    # Per-bin totals: sum partials across cores/rows FIRST, then |.|, then /N.
    per_bin = jnp.sum(diff.reshape(n_par, _SUB, _LANES), axis=(0, 1))
    ece = (jnp.sum(jnp.abs(per_bin)) / jnp.float32(n)).reshape(1)
    return scaled, ece


def ece_loss(logits, labels, n_bins=N_BINS, *, tile_rows=None):
    """_ECELoss on already-scaled logits (reuses the fused kernel with T=1)."""
    one = jnp.ones((1,), jnp.float32)
    _, ece = temperature_scale_and_ece(logits, labels, one, n_bins,
                                       tile_rows=tile_rows)
    return ece


# ----------------------------------------------------------------------------
# Pure-JAX reference mirroring the PyTorch _ECELoss.forward (sigmoid version)
# ----------------------------------------------------------------------------
def _ece_ref(scaled_logits, labels, n_bins=N_BINS):
    sig = 1.0 / (1.0 + jnp.exp(-scaled_logits))
    conf = jnp.max(sig, axis=1)
    pred = jnp.argmax(sig, axis=1)
    true = jnp.argmax(labels, axis=1)
    acc = (pred == true).astype(jnp.float32)
    bounds = jnp.linspace(0.0, 1.0, n_bins + 1)
    ece = jnp.zeros((), jnp.float32)
    for b in range(n_bins):
        in_bin = (conf > bounds[b]) & (conf <= bounds[b + 1])
        cnt = jnp.sum(in_bin.astype(jnp.float32))
        safe = jnp.maximum(cnt, 1.0)
        acc_in = jnp.sum(acc * in_bin) / safe
        conf_in = jnp.sum(conf * in_bin) / safe
        ece = ece + jnp.where(cnt > 0,
                              jnp.abs(conf_in - acc_in) * (cnt / conf.shape[0]),
                              0.0)
    return ece.reshape(1)


if __name__ == "__main__":
    key = jax.random.PRNGKey(0)
    k1, k2 = jax.random.split(key)

    # Small shapes consistent with the module: batch=16 samples, 8 classes.
    N, C = 16, 8
    logits = jax.random.normal(k1, (N, C), dtype=jnp.float32)
    label_idx = jax.random.randint(k2, (N,), 0, C)
    labels = jax.nn.one_hot(label_idx, C, dtype=jnp.float32)
    temperature = jnp.full((1,), 1.5, dtype=jnp.float32)

    # ModelWithTemperature.forward tail: temperature_scale(model(x)).
    scaled = temperature_scale(logits, temperature)
    # set_temperature metric path: scaled logits + ECE in one fused HBM pass.
    scaled_f, ece = temperature_scale_and_ece(logits, labels, temperature)
    jax.block_until_ready((scaled, scaled_f, ece))

    scaled_ref = logits / temperature
    ece_ref = _ece_ref(scaled_ref, labels)

    assert scaled.shape == (N, C)
    assert jnp.allclose(scaled, scaled_ref, rtol=1e-6, atol=1e-6)
    assert jnp.allclose(scaled_f, scaled_ref, rtol=1e-6, atol=1e-6)
    assert ece.shape == (1,)
    assert jnp.allclose(ece, ece_ref, rtol=1e-5, atol=1e-6), (ece, ece_ref)

    # Exercise the multi-tile path (partial last tile, 2-way core split,
    # clamped spare tile) by forcing an 8-row tile on a non-multiple batch.
    N2 = 36
    k3, k4 = jax.random.split(k2)
    logits2 = jax.random.normal(k3, (N2, C), dtype=jnp.float32)
    labels2 = jax.nn.one_hot(jax.random.randint(k4, (N2,), 0, C), C,
                             dtype=jnp.float32)
    scaled2, ece2 = temperature_scale_and_ece(logits2, labels2, temperature,
                                              tile_rows=8)
    jax.block_until_ready((scaled2, ece2))
    scaled2_ref = logits2 / temperature
    assert jnp.allclose(scaled2, scaled2_ref, rtol=1e-6, atol=1e-6)
    assert jnp.allclose(ece2, _ece_ref(scaled2_ref, labels2),
                        rtol=1e-5, atol=1e-6)

    print("KERNEL_OK")
</pallas_src>

<mosaic_0001>
module attributes {stable_mosaic.version = 11 : i64} {
  func.func @_temp_scale_kernel(%arg0: i32, %arg1: memref<1xf32, #tpu.memory_space<smem>>, %arg2: memref<16x8xf32, #tpu.memory_space<vmem>>, %arg3: memref<16x8xf32, #tpu.memory_space<vmem>>) attributes {dimension_semantics = [#tpu.dimension_semantics<parallel>], iteration_bounds = array<i64: 1>, scalar_prefetch = 1 : i64, scratch_operands = 0 : i64, tpu.core_type = #tpu.core_type<tc>, window_params = [{transform_indices = @transform_0, window_bounds = array<i64: 16, 8>}, {transform_indices = @transform_1, window_bounds = array<i64: 16, 8>}]} {
    %c0 = arith.constant 0 : index
    %0 = memref.load %arg1[%c0] : memref<1xf32, #tpu.memory_space<smem>>
    %cst = arith.constant 1.000000e+00 : f32
    %1 = arith.divf %cst, %0 : f32
    %c0_0 = arith.constant 0 : index
    %c0_1 = arith.constant 0 : index
    %2 = vector.load %arg2[%c0_0, %c0_1] : memref<16x8xf32, #tpu.memory_space<vmem>>, vector<16x8xf32>
    %3 = vector.broadcast %1 : f32 to vector<16x8xf32>
    %4 = arith.mulf %2, %3 : vector<16x8xf32>
    %c0_2 = arith.constant 0 : index
    %c0_3 = arith.constant 0 : index
    %5 = vector.load %arg3[%c0_2, %c0_3] : memref<16x8xf32, #tpu.memory_space<vmem>>, vector<16x8xf32>
    tpu.vector_store %arg3[%c0_2, %c0_3], %4 {strides = array<i32>} : memref<16x8xf32, #tpu.memory_space<vmem>>, vector<16x8xf32>,
    return
  }
  func.func @transform_0(%arg0: i32, %arg1: memref<1xf32, #tpu.memory_space<smem>>) -> (i32, i32) {
    %c0_i32 = arith.constant 0 : i32
    %c0_i32_0 = arith.constant 0 : i32
    return %arg0, %c0_i32 : i32, i32
  }
  func.func @transform_1(%arg0: i32, %arg1: memref<1xf32, #tpu.memory_space<smem>>) -> (i32, i32) {
    %c0_i32 = arith.constant 0 : i32
    %c0_i32_0 = arith.constant 0 : i32
    return %arg0, %c0_i32 : i32, i32
  }
}

</mosaic_0001>

<bundles_post_ra>
// kernel: tpu_custom_call.1
= control target key start
LH: loop header
LB: loop body
LE: loop exit
PB: predicated region body
PF: predicated region fallthrough
CT: control target
= control target key end

     0   :  { %vm19_vm0 = vcmask 64512   ;;  %s60_s0 = inlined_call_operand.<no memory space> [shape: f32[1], index: 0, kind: input, shape index: {}]   ;;  %s61_s1 = inlined_call_operand.vmem [shape: f32[16,8], index: 1, kind: input, shape index: {}]   ;;  %s62_s2 = inlined_call_operand.vmem [shape: f32[16,8], index: 2, kind: output, shape index: {}]  }
   0x1   :  { %v11_v0 = vstv %s60_s0  ;;  %v14_v2 = vld [vmem:[%s61_s1] sm:$0xff]  ;;  %v15_v3 = vld [vmem:[%s61_s1 + $0x8] sm:$0xff] }
   0x2   :  { %28 = vrcp.f32 %v11_v0 }
   0xf   :  { %v29_v1 = vpop.eup %28 }
  0x10   :  { %26 = vpush %v29_v1 }
  0x41   :  { %s27_s15 = spop %26 }
  0x42   :  { %v16_v4 = vstv %s27_s15 }
  0x43   :  { %v17_v5 = vmul.f32 %v16_v4, %v14_v2  ;;  %v18_v6 = vmul.f32 %v16_v4, %v15_v3 }
  0x45   :  { %20 = vst.msk [vmem:[%s62_s2] sm:$0xff] %vm19_vm0, %v17_v5  ;;  %21 = vst.msk [vmem:[%s62_s2 + $0x8] sm:$0xff] %vm19_vm0, %v18_v6 }

</bundles_post_ra>
